<compile_context>
chip_gen: v7x
topology: tpu7x:2x2x1
jax: 0.10.0
libtpu: 0.0.40
codegen_flags: <defaults>
</compile_context>

<pallas_src>
import jax
import jax.numpy as jnp
from jax.experimental import pallas as pl
from jax.experimental.pallas import tpu as pltpu


def _policy_kernel(ids_ref, lens_ref,                 # scalar prefetch (SMEM)
                   emb_ref, wqkv_ref, wo_ref, wlm_ref,  # VMEM inputs
                   logits_ref):                        # VMEM output (1, S, V)
    b = pl.program_id(0)
    S = logits_ref.shape[1]
    D = wo_ref.shape[0]

    # ---- embedding gather from the VMEM-resident table (no HBM round trip) --
    rows = [emb_ref[pl.ds(ids_ref[b, i], 1), :] for i in range(S)]   # S x (1, D)
    x = jnp.concatenate(rows, axis=0)                                # [S, D] f32
    x_bf = x.astype(jnp.bfloat16)

    # ---- fused QKV projection: one MXU push instead of three ----------------
    qkv = jnp.dot(x_bf, wqkv_ref[...],
                  preferred_element_type=jnp.float32)                # [S, 3D]
    q = qkv[:, 0 * D:1 * D].astype(jnp.bfloat16)
    k = qkv[:, 1 * D:2 * D].astype(jnp.bfloat16)
    v = qkv[:, 2 * D:3 * D].astype(jnp.bfloat16)

    # ---- attention scores: NT contraction (no explicit transpose of k) ------
    # TODO(synk): if S grows, block over keys with an online softmax instead of
    # materializing the [S, S] tile (v7x has only 64 MiB physical VMEM).
    scale = 1.0 / jnp.sqrt(jnp.float32(D))
    scores = jax.lax.dot_general(
        q, k, (((1,), (1,)), ((), ())),
        preferred_element_type=jnp.float32) * scale                  # [S, S] f32

    # ---- key-padding mask built in-kernel from the prefetched valid length --
    col = jax.lax.broadcasted_iota(jnp.int32, (1, S), 1)
    key_valid = col < lens_ref[b]                                    # [1, S]
    scores = jnp.where(key_valid, scores, -1e30)

    # ---- numerically stable softmax in f32 ----------------------------------
    m = jnp.max(scores, axis=-1, keepdims=True)
    p = jnp.exp(scores - m)
    denom = jnp.sum(p, axis=-1, keepdims=True)
    p = p * pl.reciprocal(denom, approx=True)

    # ---- attention output + residual + LM head -------------------------------
    attn = jnp.dot(p.astype(jnp.bfloat16), v,
                   preferred_element_type=jnp.float32)               # [S, D]
    h = x + jnp.dot(attn.astype(jnp.bfloat16), wo_ref[...],
                    preferred_element_type=jnp.float32)              # [S, D] f32
    logits_ref[0] = jnp.dot(h.astype(jnp.bfloat16), wlm_ref[...],
                            preferred_element_type=jnp.float32)      # [S, V]


def policy_forward(input_ids, attention_mask, params):
    """Equivalent of `Policy.forward`: returns `model(...).logits` [B, S, V]."""
    B, S = input_ids.shape
    V, D = params["emb"].shape

    # NOTE: assumes a right-padded (contiguous-prefix) attention_mask, which is
    # what standard tokenizers produce; the kernel consumes per-batch lengths.
    lens = jnp.sum(attention_mask.astype(jnp.int32), axis=-1)        # [B]
    ids = input_ids.astype(jnp.int32)                                # [B, S]

    emb = params["emb"].astype(jnp.float32)                          # [V, D]
    wqkv = jnp.concatenate([params["wq"], params["wk"], params["wv"]],
                           axis=1).astype(jnp.bfloat16)              # [D, 3D]
    wo = params["wo"].astype(jnp.bfloat16)                           # [D, D]
    wlm = params["wlm"].astype(jnp.bfloat16)                         # [D, V]

    grid_spec = pltpu.PrefetchScalarGridSpec(
        num_scalar_prefetch=2,      # ids, lens -> SMEM (also fed to index_maps)
        grid=(B,),
        in_specs=[
            pl.BlockSpec((V, D), lambda b, ids, lens: (0, 0)),       # emb
            pl.BlockSpec((D, 3 * D), lambda b, ids, lens: (0, 0)),   # wqkv
            pl.BlockSpec((D, D), lambda b, ids, lens: (0, 0)),       # wo
            pl.BlockSpec((D, V), lambda b, ids, lens: (0, 0)),       # lm head
        ],
        out_specs=pl.BlockSpec((1, S, V), lambda b, ids, lens: (b, 0, 0)),
    )

    return pl.pallas_call(
        _policy_kernel,
        out_shape=jax.ShapeDtypeStruct((B, S, V), jnp.float32),
        grid_spec=grid_spec,
        compiler_params=pltpu.CompilerParams(
            dimension_semantics=("parallel",)),
    )(ids, lens, emb, wqkv, wo, wlm)


def _reference_forward(input_ids, attention_mask, params):
    """Pure-JAX reference emulating the kernel's bf16-input / f32-accum matmuls."""
    bf = jnp.bfloat16
    x = jnp.take(params["emb"].astype(jnp.float32), input_ids, axis=0)  # [B,S,D]
    D = x.shape[-1]
    wqkv = jnp.concatenate([params["wq"], params["wk"], params["wv"]], axis=1)

    qkv = jnp.einsum("bsd,de->bse", x.astype(bf), wqkv.astype(bf),
                     preferred_element_type=jnp.float32)
    q, k, v = qkv[..., :D], qkv[..., D:2 * D], qkv[..., 2 * D:]
    scale = 1.0 / jnp.sqrt(jnp.float32(D))
    scores = jnp.einsum("bqd,bkd->bqk", q.astype(bf), k.astype(bf),
                        preferred_element_type=jnp.float32) * scale
    scores = jnp.where(attention_mask[:, None, :] > 0, scores, -1e30)
    p = jax.nn.softmax(scores, axis=-1)
    attn = jnp.einsum("bqk,bkd->bqd", p.astype(bf), v.astype(bf),
                      preferred_element_type=jnp.float32)
    h = x + jnp.einsum("bsd,de->bse", attn.astype(bf), params["wo"].astype(bf),
                       preferred_element_type=jnp.float32)
    return jnp.einsum("bsd,dv->bsv", h.astype(bf), params["wlm"].astype(bf),
                      preferred_element_type=jnp.float32)


if __name__ == "__main__":
    B, S, D, V = 2, 8, 32, 128

    key = jax.random.PRNGKey(0)
    k_ids, k_emb, k_q, k_k, k_v, k_o, k_lm = jax.random.split(key, 7)

    input_ids = jax.random.randint(k_ids, (B, S), 0, V, dtype=jnp.int32)
    # last two tokens of batch 1 padded out (right padding)
    attention_mask = jnp.ones((B, S), dtype=jnp.int32).at[1, -2:].set(0)

    params = {
        "emb": 0.02 * jax.random.normal(k_emb, (V, D), jnp.float32),
        "wq": 0.02 * jax.random.normal(k_q, (D, D), jnp.float32),
        "wk": 0.02 * jax.random.normal(k_k, (D, D), jnp.float32),
        "wv": 0.02 * jax.random.normal(k_v, (D, D), jnp.float32),
        "wo": 0.02 * jax.random.normal(k_o, (D, D), jnp.float32),
        "wlm": 0.02 * jax.random.normal(k_lm, (D, V), jnp.float32),
    }

    logits = policy_forward(input_ids, attention_mask, params)
    logits = jax.block_until_ready(logits)

    ref = _reference_forward(input_ids, attention_mask, params)
    assert logits.shape == (B, S, V)
    assert jnp.allclose(logits, ref, atol=1e-4, rtol=2e-2), "mismatch vs reference"

    print("KERNEL_OK")
</pallas_src>

<mosaic_0001>
module attributes {stable_mosaic.version = 11 : i64} {
  func.func @_policy_kernel(%arg0: i32, %arg1: memref<2x8xi32, #tpu.memory_space<smem>>, %arg2: memref<2xi32, #tpu.memory_space<smem>>, %arg3: memref<128x32xf32, #tpu.memory_space<vmem>>, %arg4: memref<32x96xbf16, #tpu.memory_space<vmem>>, %arg5: memref<32x32xbf16, #tpu.memory_space<vmem>>, %arg6: memref<32x128xbf16, #tpu.memory_space<vmem>>, %arg7: memref<1x8x128xf32, #tpu.memory_space<vmem>>) attributes {dimension_semantics = [#tpu.dimension_semantics<parallel>], iteration_bounds = array<i64: 2>, scalar_prefetch = 2 : i64, scratch_operands = 0 : i64, tpu.core_type = #tpu.core_type<tc>, window_params = [{pipeline_mode = #tpu.pipeline_mode<synchronous>, transform_indices = @transform_0, window_bounds = array<i64: 128, 32>}, {pipeline_mode = #tpu.pipeline_mode<synchronous>, transform_indices = @transform_1, window_bounds = array<i64: 32, 96>}, {pipeline_mode = #tpu.pipeline_mode<synchronous>, transform_indices = @transform_2, window_bounds = array<i64: 32, 32>}, {pipeline_mode = #tpu.pipeline_mode<synchronous>, transform_indices = @transform_3, window_bounds = array<i64: 32, 128>}, {transform_indices = @transform_4, window_bounds = array<i64: 1, 8, 128>}]} {
    %0 = arith.index_cast %arg0 : i32 to index
    %c0 = arith.constant 0 : index
    %1 = memref.load %arg1[%0, %c0] : memref<2x8xi32, #tpu.memory_space<smem>>
    %2 = arith.index_cast %1 : i32 to index
    %c0_0 = arith.constant 0 : index
    %3 = vector.load %arg3[%2, %c0_0] : memref<128x32xf32, #tpu.memory_space<vmem>>, vector<1x32xf32>
    %4 = arith.index_cast %arg0 : i32 to index
    %c1 = arith.constant 1 : index
    %5 = memref.load %arg1[%4, %c1] : memref<2x8xi32, #tpu.memory_space<smem>>
    %6 = arith.index_cast %5 : i32 to index
    %c0_1 = arith.constant 0 : index
    %7 = vector.load %arg3[%6, %c0_1] : memref<128x32xf32, #tpu.memory_space<vmem>>, vector<1x32xf32>
    %8 = arith.index_cast %arg0 : i32 to index
    %c2 = arith.constant 2 : index
    %9 = memref.load %arg1[%8, %c2] : memref<2x8xi32, #tpu.memory_space<smem>>
    %10 = arith.index_cast %9 : i32 to index
    %c0_2 = arith.constant 0 : index
    %11 = vector.load %arg3[%10, %c0_2] : memref<128x32xf32, #tpu.memory_space<vmem>>, vector<1x32xf32>
    %12 = arith.index_cast %arg0 : i32 to index
    %c3 = arith.constant 3 : index
    %13 = memref.load %arg1[%12, %c3] : memref<2x8xi32, #tpu.memory_space<smem>>
    %14 = arith.index_cast %13 : i32 to index
    %c0_3 = arith.constant 0 : index
    %15 = vector.load %arg3[%14, %c0_3] : memref<128x32xf32, #tpu.memory_space<vmem>>, vector<1x32xf32>
    %16 = arith.index_cast %arg0 : i32 to index
    %c4 = arith.constant 4 : index
    %17 = memref.load %arg1[%16, %c4] : memref<2x8xi32, #tpu.memory_space<smem>>
    %18 = arith.index_cast %17 : i32 to index
    %c0_4 = arith.constant 0 : index
    %19 = vector.load %arg3[%18, %c0_4] : memref<128x32xf32, #tpu.memory_space<vmem>>, vector<1x32xf32>
    %20 = arith.index_cast %arg0 : i32 to index
    %c5 = arith.constant 5 : index
    %21 = memref.load %arg1[%20, %c5] : memref<2x8xi32, #tpu.memory_space<smem>>
    %22 = arith.index_cast %21 : i32 to index
    %c0_5 = arith.constant 0 : index
    %23 = vector.load %arg3[%22, %c0_5] : memref<128x32xf32, #tpu.memory_space<vmem>>, vector<1x32xf32>
    %24 = arith.index_cast %arg0 : i32 to index
    %c6 = arith.constant 6 : index
    %25 = memref.load %arg1[%24, %c6] : memref<2x8xi32, #tpu.memory_space<smem>>
    %26 = arith.index_cast %25 : i32 to index
    %c0_6 = arith.constant 0 : index
    %27 = vector.load %arg3[%26, %c0_6] : memref<128x32xf32, #tpu.memory_space<vmem>>, vector<1x32xf32>
    %28 = arith.index_cast %arg0 : i32 to index
    %c7 = arith.constant 7 : index
    %29 = memref.load %arg1[%28, %c7] : memref<2x8xi32, #tpu.memory_space<smem>>
    %30 = arith.index_cast %29 : i32 to index
    %c0_7 = arith.constant 0 : index
    %31 = vector.load %arg3[%30, %c0_7] : memref<128x32xf32, #tpu.memory_space<vmem>>, vector<1x32xf32>
    %32 = tpu.concatenate %3, %7, %11, %15, %19, %23, %27, %31 in 0 : vector<1x32xf32>, vector<1x32xf32>, vector<1x32xf32>, vector<1x32xf32>, vector<1x32xf32>, vector<1x32xf32>, vector<1x32xf32>, vector<1x32xf32> -> vector<8x32xf32>
    %33 = arith.truncf %32 : vector<8x32xf32> to vector<8x32xbf16>
    %c0_8 = arith.constant 0 : index
    %c0_9 = arith.constant 0 : index
    %34 = vector.load %arg4[%c0_8, %c0_9] : memref<32x96xbf16, #tpu.memory_space<vmem>>, vector<32x96xbf16>
    %cst = arith.constant dense<0.000000e+00> : vector<8x96xf32>
    %35 = tpu.matmul %33, %34, %cst {dimension_numbers = #tpu.dot_dimension_numbers<[1], [0], [0], [1], [0, 0, 1, 1], [], []>} : vector<8x32xbf16>, vector<32x96xbf16>, vector<8x96xf32> -> vector<8x96xf32>
    %36 = vector.extract_strided_slice %35 {offsets = [0, 0], sizes = [8, 32], strides = [1, 1]} : vector<8x96xf32> to vector<8x32xf32>
    %37 = arith.truncf %36 : vector<8x32xf32> to vector<8x32xbf16>
    %38 = vector.extract_strided_slice %35 {offsets = [0, 32], sizes = [8, 32], strides = [1, 1]} : vector<8x96xf32> to vector<8x32xf32>
    %39 = arith.truncf %38 : vector<8x32xf32> to vector<8x32xbf16>
    %40 = vector.extract_strided_slice %35 {offsets = [0, 64], sizes = [8, 32], strides = [1, 1]} : vector<8x96xf32> to vector<8x32xf32>
    %41 = arith.truncf %40 : vector<8x32xf32> to vector<8x32xbf16>
    %cst_10 = arith.constant 3.200000e+01 : f32
    %42 = math.sqrt %cst_10 : f32
    %cst_11 = arith.constant 1.000000e+00 : f32
    %43 = arith.divf %cst_11, %42 : f32
    %cst_12 = arith.constant dense<0.000000e+00> : vector<8x8xf32>
    %44 = tpu.matmul %37, %39, %cst_12 {dimension_numbers = #tpu.dot_dimension_numbers<[1], [1], [0], [0], [0, 0, 1, 0], [], []>} : vector<8x32xbf16>, vector<8x32xbf16>, vector<8x8xf32> -> vector<8x8xf32>
    %45 = vector.broadcast %43 : f32 to vector<8x8xf32>
    %46 = arith.mulf %44, %45 : vector<8x8xf32>
    %47 = tpu.iota {dimensions = array<i32: 1>} : vector<1x8xi32>
    %48 = arith.index_cast %arg0 : i32 to index
    %49 = memref.load %arg2[%48] : memref<2xi32, #tpu.memory_space<smem>>
    %50 = vector.broadcast %49 : i32 to vector<1x8xi32>
    %51 = arith.cmpi slt, %47, %50 : vector<1x8xi32>
    %cst_13 = arith.constant -1.000000e+30 : f32
    %52 = vector.shape_cast %51 : vector<1x8xi1> to vector<1x8xi1>
    %53 = vector.broadcast %52 : vector<1x8xi1> to vector<8x8xi1>
    %54 = vector.broadcast %cst_13 : f32 to vector<8x8xf32>
    %55 = arith.select %53, %46, %54 : vector<8x8xi1>, vector<8x8xf32>
    %cst_14 = arith.constant dense<0xFF800000> : vector<8xf32>
    %56 = vector.multi_reduction <maximumf>, %55, %cst_14 [1] : vector<8x8xf32> to vector<8xf32>
    %57 = vector.shape_cast %56 : vector<8xf32> to vector<8x1xf32>
    %58 = vector.broadcast %57 : vector<8x1xf32> to vector<8x8xf32>
    %59 = arith.subf %55, %58 : vector<8x8xf32>
    %60 = math.exp %59 : vector<8x8xf32>
    %cst_15 = arith.constant dense<0.000000e+00> : vector<8xf32>
    %61 = vector.multi_reduction <add>, %60, %cst_15 [1] : vector<8x8xf32> to vector<8xf32>
    %62 = vector.shape_cast %61 : vector<8xf32> to vector<8x1xf32>
    %63 = tpu.reciprocal %62 {approx = true} : vector<8x1xf32> -> vector<8x1xf32>
    %64 = vector.broadcast %63 : vector<8x1xf32> to vector<8x8xf32>
    %65 = arith.mulf %60, %64 : vector<8x8xf32>
    %66 = arith.truncf %65 : vector<8x8xf32> to vector<8x8xbf16>
    %cst_16 = arith.constant dense<0.000000e+00> : vector<8x32xf32>
    %67 = tpu.matmul %66, %41, %cst_16 {dimension_numbers = #tpu.dot_dimension_numbers<[1], [0], [0], [1], [0, 0, 1, 1], [], []>} : vector<8x8xbf16>, vector<8x32xbf16>, vector<8x32xf32> -> vector<8x32xf32>
    %68 = arith.truncf %67 : vector<8x32xf32> to vector<8x32xbf16>
    %c0_17 = arith.constant 0 : index
    %c0_18 = arith.constant 0 : index
    %69 = vector.load %arg5[%c0_17, %c0_18] : memref<32x32xbf16, #tpu.memory_space<vmem>>, vector<32x32xbf16>
    %cst_19 = arith.constant dense<0.000000e+00> : vector<8x32xf32>
    %70 = tpu.matmul %68, %69, %cst_19 {dimension_numbers = #tpu.dot_dimension_numbers<[1], [0], [0], [1], [0, 0, 1, 1], [], []>} : vector<8x32xbf16>, vector<32x32xbf16>, vector<8x32xf32> -> vector<8x32xf32>
    %71 = arith.addf %32, %70 : vector<8x32xf32>
    %72 = arith.truncf %71 : vector<8x32xf32> to vector<8x32xbf16>
    %c0_20 = arith.constant 0 : index
    %c0_21 = arith.constant 0 : index
    %73 = vector.load %arg6[%c0_20, %c0_21] : memref<32x128xbf16, #tpu.memory_space<vmem>>, vector<32x128xbf16>
    %cst_22 = arith.constant dense<0.000000e+00> : vector<8x128xf32>
    %74 = tpu.matmul %72, %73, %cst_22 {dimension_numbers = #tpu.dot_dimension_numbers<[1], [0], [0], [1], [0, 0, 1, 1], [], []>} : vector<8x32xbf16>, vector<32x128xbf16>, vector<8x128xf32> -> vector<8x128xf32>
    %c0_23 = arith.constant 0 : index
    %c0_24 = arith.constant 0 : index
    %c0_25 = arith.constant 0 : index
    %75 = vector.load %arg7[%c0_23, %c0_24, %c0_25] : memref<1x8x128xf32, #tpu.memory_space<vmem>>, vector<1x8x128xf32>
    %76 = vector.shape_cast %75 : vector<1x8x128xf32> to vector<8x128xf32>
    %77 = vector.shape_cast %74 : vector<8x128xf32> to vector<1x8x128xf32>
    tpu.vector_store %arg7[%c0_23, %c0_24, %c0_25], %77 {strides = array<i32>} : memref<1x8x128xf32, #tpu.memory_space<vmem>>, vector<1x8x128xf32>,
    return
  }
  func.func @transform_0(%arg0: i32, %arg1: memref<2x8xi32, #tpu.memory_space<smem>>, %arg2: memref<2xi32, #tpu.memory_space<smem>>) -> (i32, i32) {
    %c0_i32 = arith.constant 0 : i32
    %c0_i32_0 = arith.constant 0 : i32
    %c0_i32_1 = arith.constant 0 : i32
    return %c0_i32, %c0_i32_0 : i32, i32
  }
  func.func @transform_1(%arg0: i32, %arg1: memref<2x8xi32, #tpu.memory_space<smem>>, %arg2: memref<2xi32, #tpu.memory_space<smem>>) -> (i32, i32) {
    %c0_i32 = arith.constant 0 : i32
    %c0_i32_0 = arith.constant 0 : i32
    %c0_i32_1 = arith.constant 0 : i32
    return %c0_i32, %c0_i32_0 : i32, i32
  }
  func.func @transform_2(%arg0: i32, %arg1: memref<2x8xi32, #tpu.memory_space<smem>>, %arg2: memref<2xi32, #tpu.memory_space<smem>>) -> (i32, i32) {
    %c0_i32 = arith.constant 0 : i32
    %c0_i32_0 = arith.constant 0 : i32
    %c0_i32_1 = arith.constant 0 : i32
    return %c0_i32, %c0_i32_0 : i32, i32
  }
  func.func @transform_3(%arg0: i32, %arg1: memref<2x8xi32, #tpu.memory_space<smem>>, %arg2: memref<2xi32, #tpu.memory_space<smem>>) -> (i32, i32) {
    %c0_i32 = arith.constant 0 : i32
    %c0_i32_0 = arith.constant 0 : i32
    %c0_i32_1 = arith.constant 0 : i32
    return %c0_i32, %c0_i32_0 : i32, i32
  }
  func.func @transform_4(%arg0: i32, %arg1: memref<2x8xi32, #tpu.memory_space<smem>>, %arg2: memref<2xi32, #tpu.memory_space<smem>>) -> (i32, i32, i32) {
    %c0_i32 = arith.constant 0 : i32
    %c0_i32_0 = arith.constant 0 : i32
    %c0_i32_1 = arith.constant 0 : i32
    return %arg0, %c0_i32, %c0_i32_0 : i32, i32, i32
  }
}

</mosaic_0001>

<bundles_post_ra>
// kernel: tpu_custom_call.1
= control target key start
LH: loop header
LB: loop body
LE: loop exit
PB: predicated region body
PF: predicated region fallthrough
CT: control target
= control target key end

     0   :  { %s1072_s0 = inlined_call_operand.vmem [shape: s32[2,8], index: 0, kind: input, shape index: {}]   ;;  %s1073_s2 = inlined_call_operand.vmem [shape: f32[128,32], index: 2, kind: input, shape index: {}]   ;;  %s1074_s3 = inlined_call_operand.vmem [shape: bf16[32,96], index: 3, kind: input, shape index: {}]   ;;  %s1075_s4 = inlined_call_operand.vmem [shape: bf16[32,32], index: 4, kind: input, shape index: {}]   ;;  %s1076_s5 = inlined_call_operand.vmem [shape: bf16[32,128], index: 5, kind: input, shape index: {}]   ;;  %s1077_s6 = inlined_call_operand.hbm [shape: f32[2,8,128], index: 6, kind: output, shape index: {}]   ;;  %s1078_s1 = inlined_call_operand.vmem [shape: s32[2], index: 1, kind: input, shape index: {}]  }
   0x1   :  { %1083 = sst [smem:[#allocation13_spill]] %s1074_s3  ;;  %s11_s23 = sshll.u32 %s1072_s0, 4  ;;  %s12_s23 = int_to_ptr.vmem [resolvable:$true] %s11_s23 }
   0x2   :  { %s15_s26 = sshll.u32 %s1078_s1, 4  ;;  %s752_s27 = scalar_lea.vmem %s12_s23, 32  ;;  %s16_s26 = int_to_ptr.vmem [resolvable:$true] %s15_s26 }
   0x3   :  { %p753_p0 = scmp.ne.s32.totalorder %s12_s23, %s752_s27  ;;  %p757_p1 = scmp.lt.s32.totalorder %s12_s23, %s12_s23 }
   0x4   :  { %p758_p2 = scmp.lt.s32.totalorder %s752_s27, %s752_s27 }
   0x6   :  { %p759_p3 = por %p758_p2, %p757_p1 }
   0x8   :  { %p760_p4 = pnand %p759_p3, %p753_p0 }
   0xa   :  { %763 = shalt.err (!%p760_p4)  }
   0xb   :  { %s842_s28 = smov [#allocation3]   ;;  %s764_s29 = scalar_lea.vmem %s16_s26, 16 }
   0xc   :  { %14 = dma.vmem_to_smem %s12_s23, 32, %s842_s28, [#allocation2] }
   0xd   :  { %p765_p5 = scmp.ne.s32.totalorder %s16_s26, %s764_s29  ;;  %p769_p6 = scmp.lt.s32.totalorder %s16_s26, %s16_s26 }
   0xe   :  { %p770_p7 = scmp.lt.s32.totalorder %s764_s29, %s764_s29 }
  0x10   :  { %p771_p8 = por %p770_p7, %p769_p6 }
  0x12   :  { %p772_p9 = pnand %p771_p8, %p765_p5 }
  0x14   :  { %775 = shalt.err (!%p772_p9)  }
  0x15   :  { %s843_s0 = smov [#allocation4]  }
  0x16   :  { %18 = dma.vmem_to_smem %s16_s26, 16, %s843_s0, [#allocation2] }
  0x17   :  { %820 = dma.done.wait [#allocation2], 48 }
  0x18   :  { %821 = vsyncadd [#allocation2], 4294967248 }
  0x19   :  { %20 = sfence }
  0x1a   :  { %21 = vsyncpa [#allocation6], 0 }
  0x1b   :  { %23 = vsyncpa [#allocation6 + $0x1], 0  ;;  %s890_s1 = smov 0   ;;  %s892_s30 = smov 0  }
  0x1c   :  { %s894_s7 = smov 0   ;;  %s896_s8 = smov 0  }
  0x1d LB: > { %1084 = sst [smem:[#allocation9_spill]] %s836_s7  ;;  %s911_s9 = sadd.s32 4294967295, %s840_s8   ;;  %s840_s8 = sphi %s896_s8, %s1092_s8   ;;  %s836_s7 = sphi %s894_s7, %s1094_s7   ;;  %s832_s30 = sphi %s892_s30, %s1096_s30   ;;  %s828_s1 = sphi %s890_s1, %s1095_s1  }
  0x1e   : > { %s628_s10 = sadd.s32 4294967294, %s840_s8   ;;  %s915_s11 = sadd.s32 1, %s840_s8  }
  0x1f   : > { %1085 = sst [smem:[#allocation10_spill]] %s915_s11  ;;  %s120_s12 = sadd.s32 1, %s836_s7 }
  0x20   : > { %s117_s13 = ssub.s32 %s840_s8, %s915_s11  ;;  %p130_p10 = scmp.ne.s32.totalorder %s836_s7, %s832_s30 }
  0x21   : > { %p118_p11 = scmp.eq.s32.totalorder %s117_s13, 0  ;;  %p131_p12 = scmp.eq.s32.totalorder %s911_s9, 1 }
  0x22   : > { %p136_p13 = scmp.ne.s32.totalorder %s832_s30, %s828_s1  ;;  %p137_p0 = scmp.eq.s32.totalorder %s628_s10, 1 }
  0x23   : > { %s926_s14 = scalar_select %p118_p11, %s836_s7, %s120_s12  }
  0x24   : > { %p928_p1 = por %p131_p12, %p130_p10  ;;  %p932_p2 = por %p137_p0, %p136_p13 }
  0x25   : > { %1086 = sst [smem:[#allocation11_spill]] %s926_s14  ;;  %p630_p3 = scmp.ge.s32.totalorder %s840_s8, 1 }
  0x26   : > { %s1088_s16 = scalar_select %p932_p2, 1, 0 }
  0x27   : > { %p167_p4 = scmp.lt.s32.totalorder %s840_s8, 3 }
  0x28   : > { %1089 = sst [smem:[#allocation12_spill]] %s1088_s16 }
  0x29   : > { %p168_p5 = pnand %p630_p3, %p167_p4 }
  0x2a   : > { %s1090_s3 = sld [smem:[#allocation13_spill]] (!%p168_p5)  ;;  %v844_v1 = vmov (!%p168_p5), 0.0   ;;  %vm845_vm0 = vmmov (!%p168_p5), 0   ;;  %s949_s21 = sshll.u32 (!%p168_p5), %s911_s9, 7  ;;  %vm242_vm1 = vcmask (!%p168_p5), 1040384   ;;  %vm244_vm2 = vcmask (!%p168_p5), 1041408  }
  0x2b   : > { %171 = sbr.rel (%p168_p5) target bundleno = 1589 (0x635), region = 36  ;;  %661 = vmatprep.subr.bf16.mxu0 (!%p168_p5), %v844_v1  ;;  %669 = vmatprep.subr.bf16.mxu1 (!%p168_p5), %v844_v1  ;;  %s190_s22 = sld [smem:[#allocation3 + %s949_s21]] (!%p168_p5)  ;;  %vm246_vm3 = vcmask (!%p168_p5), 1042432   ;;  %vm248_vm4 = vcmask (!%p168_p5), 1043456   ;;  %vm250_vm5 = vcmask (!%p168_p5), 1044480   ;;  %vm252_vm6 = vcmask (!%p168_p5), 1045504  }
  0x2c   : > { %665 = vmatprep.mubr.msk.bf16.mxu0 (!%p168_p5), %vm845_vm0, %v844_v1  ;;  %s193_s23 = sadd.s32 (!%p168_p5), 1, %s949_s21  ;;  %671 = vmatprep.mubr.msk.bf16.mxu1 (!%p168_p5), %vm845_vm0, %v844_v1  ;;  %s197_s25 = sadd.s32 (!%p168_p5), 2, %s949_s21  ;;  %vm254_vm7 = vcmask (!%p168_p5), 1046528   ;;  %vm273_vm8 = vcmask (!%p168_p5), 261120   ;;  %v368_v33 = vlaneseq (!%p168_p5)  ;;  %vm376_vm10 = vcmask (!%p168_p5), 64512   ;;  %v744_v48 = vld [vmem:[%s1075_s4] sm:$0xff] (!%p168_p5)  }
  0x2d   : > { %s194_s24 = sld [smem:[#allocation3 + %s193_s23]] (!%p168_p5)  ;;  %s201_s27 = sadd.s32 (!%p168_p5), 3, %s949_s21  ;;  %v745_v49 = vld [vmem:[%s1075_s4 + $0x8] sm:$0xff] (!%p168_p5)   ;;  %v746_v56 = vld [vmem:[%s1076_s5] sm:$0xff] (!%p168_p5)  }
  0x2e   : > { %s198_s26 = sld [smem:[#allocation3 + %s197_s25]] (!%p168_p5)  ;;  %s205_s29 = sadd.s32 (!%p168_p5), 4, %s949_s21  ;;  %v369_v34 = vand.u32 (!%p168_p5), 127, %v368_v33  ;;  %v747_v62 = vld [vmem:[%s1076_s5 + $0x8] sm:$0xff] (!%p168_p5)  }
  0x2f   : > { %s202_s28 = sld [smem:[#allocation3 + %s201_s27]] (!%p168_p5)  ;;  %s209_s10 = sadd.s32 (!%p168_p5), 5, %s949_s21 }
  0x30   : > { %v742_v0 = vld [vmem:[%s1090_s3] sm:$0xff] (!%p168_p5)   ;;  %v743_v2 = vld [vmem:[%s1090_s3 + $0x8] sm:$0xff] (!%p168_p5)   ;;  %s206_s0 = sld [smem:[#allocation3 + %s205_s29]] (!%p168_p5)  ;;  %s213_s13 = sadd.s32 (!%p168_p5), 6, %s949_s21 }
  0x31   : > { %662 = vmatpush3.bf16.msra.mxu0 (!%p168_p5), %v742_v0  ;;  %s210_s12 = sld [smem:[#allocation3 + %s209_s10]] (!%p168_p5)  ;;  %s191_s19 = scalar_lea.vmem (!%p168_p5), %s1073_s2, %s190_s22 }
  0x32   : > { %663 = vmatprep.subr.bf16.mxu0 %v844_v1  ;;  %s214_s20 = sld [smem:[#allocation3 + %s213_s13]]  ;;  %s217_s25 = sadd.s32 7, %s949_s21  ;;  %v192_v3 = vld [vmem:[%s191_s19] sm:$0x1] }
  0x33   : > { %s195_s23 = scalar_lea.vmem %s1073_s2, %s194_s24  ;;  %s218_s11 = sld [smem:[#allocation3 + %s217_s25]] }
  0x34   : > { %v196_v4 = vld [vmem:[%s195_s23] sm:$0x1]  ;;  %s199_s29 = scalar_lea.vmem %s1073_s2, %s198_s26  ;;  %s185_s3 = sand.u32 1, %s832_s30  }
  0x35   : > { %664 = vmatpush3.bf16.msra.mxu0 %v743_v2  ;;  %v200_v5 = vld [vmem:[%s199_s29] sm:$0x1]  ;;  %s203_s17 = scalar_lea.vmem %s1073_s2, %s202_s28  ;;  %v222_v6 = vrot.slane %v196_v4, 7  ;;  %s1032_s28 = scalar_lea.hbm %s1077_s6, %s949_s21 }
  0x36   : > { %675 = vmatprep.subr.bf16.mxu0 %v844_v1  ;;  %v204_v7 = vld [vmem:[%s203_s17] sm:$0x1]  ;;  %s207_s14 = scalar_lea.vmem %s1073_s2, %s206_s0  ;;  %v225_v8 = vrot.slane %v200_v5, 6  ;;  %s848_s18 = smov [#allocation5]  }
  0x37   : > { %v208_v9 = vld [vmem:[%s207_s14] sm:$0x1]  ;;  %s211_s26 = scalar_lea.vmem %s1073_s2, %s210_s12  ;;  %v228_v10 = vrot.slane %v204_v7, 5  ;;  %v243_v11 = vsel %vm242_vm1, %v192_v3, %v222_v6  ;;  %s370_s12 = sld [smem:[#allocation4 + %s911_s9]] }
  0x38   : > { %v212_v12 = vld [vmem:[%s211_s26] sm:$0x1]  ;;  %s215_s13 = scalar_lea.vmem %s1073_s2, %s214_s20  ;;  %v231_v13 = vrot.slane %v208_v9, 4  ;;  %v245_v14 = vsel %vm244_vm2, %v243_v11, %v225_v8  ;;  %s847_s9 = smov 64  }
  0x39   : > { %v216_v15 = vld [vmem:[%s215_s13] sm:$0x1]  ;;  %v234_v16 = vrot.slane %v212_v12, 3  ;;  %v247_v17 = vsel %vm246_vm3, %v245_v14, %v228_v10  ;;  %s219_s19 = scalar_lea.vmem %s1073_s2, %s218_s11  ;;  %s846_s11 = smov 96  }
  0x3a   : > { %v237_v18 = vrot.slane %v216_v15, 2  ;;  %v249_v19 = vsel %vm248_vm4, %v247_v17, %v231_v13  ;;  %v220_v20 = vld [vmem:[%s219_s19] sm:$0x1]  ;;  %s631_s14 = sshll.u32 %s185_s3, 3  ;;  %s560_s13 = scalar_lea.sflag [#allocation6], %s185_s3 }
  0x3b   : > { %v251_v21 = vsel %vm250_vm5, %v249_v19, %v234_v16  ;;  %v240_v22 = vrot.slane %v220_v20, 1  ;;  %s187_s24 = scalar_lea.vmem [#allocation5], %s631_s14  ;;  %s780_s19 = sshll.u32 %s848_s18, 4  ;;  %s781_s19 = int_to_ptr.vmem [resolvable:$false] %s780_s19 }
  0x3c   : > { %v253_v23 = vsel %vm252_vm6, %v251_v21, %v237_v18  ;;  %s573_s7 = sshll.u32 %s187_s24, 4  ;;  %s1026_s7 = int_to_ptr.vmem [resolvable:$true] %s573_s7 }
  0x3d   : > { %v988_v24 = vsel %vm254_vm7, %v253_v23, %v240_v22  ;;  %v371_v35 = vstv %s370_s12  ;;  %s776_s0 = scalar_lea.vmem %s1026_s7, 128  ;;  %p783_p9 = scmp.lt.s32.totalorder %s1026_s7, %s781_s19 }
  0x3e   : > { %v256_v25 = vpack.c.bf16 %v988_v24, %v988_v24  ;;  %vm372_vm9 = vcmp.lt.s32.totalorder %v369_v34, %v371_v35  ;;  %p777_p6 = scmp.ne.s32.totalorder %s1026_s7, %s776_s0 }
  0x40   : > { %666 = vmatmul.mubr.msk.bf16.vlgmr.msra.gmra.mrb[0].mxu0 %vm273_vm8, %v256_v25  ;;  %p778_p7 = pnand %p777_p6, %p928_p1 }
  0x41   : > { %677 = vmatprep.mubr.msk.bf16.mxu0 %vm845_vm0, %v844_v1 }
  0x42   : > { %p779_p8 = pneg %p778_p7 }
 0x113   : > { %v311_v26 = vpop.f32.mrb[0].mxu0 }
 0x114   : > { %v317_v27 = vpack.c.bf16 %v311_v26, %v311_v26  ;;  %v667_v28 = vpop.f32.mrb[1].mxu0 }
 0x115   : > { %v314_v29 = vpop.f32.mrb[2].mxu0 }
 0x116   : > { %319 = vrot.lane.b32.xlu0 %v317_v27, %s846_s11  ;;  %v668_v30 = vpop.f32.mrb[3].mxu0  ;;  %s782_s11 = scalar_lea.vmem %s781_s19, 256 }
 0x117   : > { %p784_p10 = scmp.lt.s32.totalorder %s782_s11, %s776_s0 }
 0x119   : > { %p785_p11 = por %p784_p10, %p783_p9 }
 0x11b   : > { %p786_p12 = pnand %p785_p11, %p779_p8 }
 0x188   : > { %v320_v31 = vpop.permute.xlu0 %319 }
 0x189   : > { %v325_v32 = vsel %vm273_vm8, %v320_v31, 0 }
 0x18a   : > { %670 = vmatpush3.bf16.xpose.msra.mxu1 %v325_v32 }
 0x18b   : > { %681 = vmatprep.subr.bf16.mxu1 %v844_v1 }
 0x191   : > { %672 = vmatmul.mubr.msk.bf16.vlgmr.msra.gmra.mrb[0].mxu1 %vm273_vm8, %v317_v27 }
 0x192   : > { %685 = vmatprep.mubr.msk.bf16.mxu1 %vm845_vm0, %v844_v1  ;;  %682 = vmatpush3.bf16.msra.mxu1 %v744_v48 }
 0x193   : > { %683 = vmatprep.subr.bf16.mxu1 %v844_v1 }
 0x196   : > { %684 = vmatpush3.bf16.msra.mxu1 %v745_v49 }
 0x264   : > { %v361_v36 = vpop.f32.mrb[0].mxu1 }
 0x265   : > { %v367_v37 = vmul.f32 0.17677669, %v361_v36  ;;  %v673_v38 = vpop.f32.mrb[1].mxu1 }
 0x266   : > { %v364_v39 = vpop.f32.mrb[2].mxu1 }
 0x267   : > { %v674_v40 = vpop.f32.mrb[3].mxu1  ;;  %v375_v41 = vsel %vm372_vm9, %v367_v37, -1e+30 }
 0x268   : > { %v377_v42 = vsel %vm376_vm10, %v375_v41, -inf }
 0x269   : > { %378 = vmax.xlane.f32.xlu0 %v377_v42 }
 0x2f6   : > { %v379_v43 = vpop.xlane.xlu0 %378 }
 0x2f7   : > { %v380_v44 = vsub.f32 %v375_v41, %v379_v43 }
 0x2f9   : > { %v381_v45 = vmul.f32 1.442695, %v380_v44 }
 0x2fb   : > { %748 = vpow2.f32 %v381_v45 }
 0x305   : > { %v749_v46 = vpop.eup %748 }
 0x306   : > { %v383_v47 = vsel %vm376_vm10, %v749_v46, 0.0 }
 0x307   : > { %384 = vadd.xlane.f32.xlu1 %v383_v47 }
 0x318   : > { %389 = vrot.lane.b32.xlu1 %v317_v27, %s847_s9 }
 0x394   : > { %v385_v50 = vpop.xlane.xlu1 %384 }
 0x395   : > { %750 = vrcp.f32 %v385_v50 }
 0x398   : > { %v390_v51 = vpop.permute.xlu1 %389 }
 0x399   : > { %v395_v52 = vsel %vm248_vm4, %v390_v51, 0 }
 0x39a   : > { %676 = vmatpush3.bf16.msra.mxu0 %v395_v52 }
 0x39b   : > { %689 = vmatprep.subr.bf16.mxu0 %v844_v1 }
 0x39f   : > { %v751_v53 = vpop.eup %750 }
 0x3a0   : > { %v387_v54 = vmul.f32 %v751_v53, %v749_v46 }
 0x3a2   : > { %v388_v55 = vpack.c.bf16 %v387_v54, %v387_v54 }
 0x3a4   : > { %678 = vmatmul.mubr.msk.bf16.vlgmr.msra.gmra.mrb[4].mxu0 %vm376_vm10, %v388_v55 }
 0x3a5   : > { %693 = vmatprep.mubr.msk.bf16.mxu0 %vm845_vm0, %v844_v1  ;;  %690 = vmatpush3.bf16.msra.mxu0 %v746_v56 }
 0x3a6   : > { %691 = vmatprep.subr.bf16.mxu0 %v844_v1 }
 0x3a9   : > { %692 = vmatpush3.bf16.msra.mxu0 %v747_v62 }
 0x477   : > { %v431_v57 = vpop.f32.mrb[4].mxu0 }
 0x478   : > { %v437_v58 = vpack.c.bf16 %v431_v57, %v431_v57  ;;  %v679_v59 = vpop.f32.mrb[5].mxu0 }
 0x479   : > { %v434_v60 = vpop.f32.mrb[6].mxu0 }
 0x47a   : > { %v680_v61 = vpop.f32.mrb[7].mxu0  ;;  %686 = vmatmul.mubr.msk.bf16.vlgmr.msra.gmra.mrb[4].mxu1 %vm273_vm8, %v437_v58 }
 0x54d   : > { %v491_v63 = vpop.f32.mrb[4].mxu1 }
 0x54e   : > { %v497_v0 = vadd.f32 %v491_v63, %v988_v24  ;;  %v687_v2 = vpop.f32.mrb[5].mxu1 }
 0x54f   : > { %v494_v3 = vpop.f32.mrb[6].mxu1 }
 0x550   : > { %v498_v1 = vpack.c.bf16 %v497_v0, %v497_v0  ;;  %v688_v4 = vpop.f32.mrb[7].mxu1 }
 0x552   : > { %694 = vmatmul.mubr.msk.bf16.vlgmr.msra.gmra.mrb[8].mxu0 %vm273_vm8, %v498_v1 }
 0x625   : > { %v552_v5 = vpop.f32.mrb[8].mxu0 }
 0x626   : > { %558 = vst [vmem:[%s187_s24] sm:$0xff] %v552_v5  ;;  %v695_v6 = vpop.f32.mrb[9].mxu0 }
 0x627   : > { %v555_v7 = vpop.f32.mrb[10].mxu0 }
 0x628   : > { %789 = shalt.err (!%p786_p12)
}
 0x629   : > { %s790_s21 = scalar_lea.hbm %s1032_s28, 128  ;;  %s794_s20 = scalar_lea.hbm %s1077_s6, 256 }
 0x62a   : > { %p791_p13 = scmp.ne.s32.totalorder %s1032_s28, %s790_s21  ;;  %p795_p4 = scmp.lt.u32.totalorder %s1032_s28, %s1077_s6 }
 0x62b   : > { %p796_p5 = scmp.lt.u32.totalorder %s794_s20, %s790_s21  ;;  %p798_p7 = scmp.lt.u32.totalorder %s790_s21, %s1032_s28 }
 0x62c   : > { %p792_p0 = pnand %p791_p13, %p928_p1 }
 0x62d   : > { %p797_p6 = por %p796_p5, %p795_p4 }
 0x62e   : > { %p793_p3 = pneg %p792_p0 }
 0x62f   : > { %p799_p8 = por %p798_p7, %p797_p6 }
 0x631   : > { %p800_p9 = pnand %p799_p8, %p793_p3 }
 0x633   : > { %803 = shalt.err (!%p800_p9)
}
 0x634   : > { %697 = dma.vmem_to_hbm [thread:$0]  (%p928_p1), %s1026_s7, 128, %s1032_s28, %s560_s13   ;;  %v696_v8 = vpop.f32.mrb[11].mxu0 }
 0x635 PF: > { %p703_p10 = scmp.ge.s32.totalorder %s840_s8, 2  ;;  %s585_s29 = sand.u32 1, %s828_s1  }
 0x636   : > { %s586_s10 = scalar_lea.sflag [#allocation6], %s585_s29 }
 0x637   : > { %p700_p11 = pnand %p703_p10, %p932_p2 }
 0x639   : > { %823 = dma.done.wait (!%p700_p11), %s586_s10, 128  }
 0x63a   : > { %825 = vsyncadd (!%p700_p11), %s586_s10, 4294967168  ;;  %s1092_s8 = sld [smem:[#allocation10_spill]]  ;;  %s1093_s17 = sld [smem:[#allocation9_spill]] }
 0x63b   : > { %s1094_s7 = sld [smem:[#allocation11_spill]]  ;;  %s1095_s1 = smov %s832_s30 }
 0x640   : > { %p26_p12 = scmp.ge.s32.totalorder %s1092_s8, 4   ;;  %s1096_s30 = smov %s1093_s17 }
 0x642   :  { %28 = sbr.rel (!%p26_p12) target bundleno = 29 (0x1d), region = 76 }
 0x649   :  { %591 = vsyncpa [#allocation6], 1 }
 0x64a   :  { %593 = vsyncpa [#allocation6 + $0x1], 1 }

</bundles_post_ra>
